<compile_context>
chip_gen: v7x
topology: tpu7x:2x2x1
jax: 0.10.0
libtpu: 0.0.40
codegen_flags: <defaults>
</compile_context>

<pallas_src>
import jax
import jax.numpy as jnp
from jax.experimental import pallas as pl
from jax.experimental.pallas import tpu as pltpu


def _round_up(x, m):
    return (x + m - 1) // m * m


def _pad2d(a, rows, cols):
    return jnp.pad(a, ((0, rows - a.shape[0]), (0, cols - a.shape[1])))


# ----------------------------------------------------------------------------
# Kernel: the whole 8-layer MLP chain for one batch tile.
# ----------------------------------------------------------------------------
def autoencoder_kernel(
    x_ref,
    w1_ref, b1_ref, w2_ref, b2_ref, w3_ref, b3_ref, w4_ref, b4_ref,
    w5_ref, b5_ref, w6_ref, b6_ref, w7_ref, b7_ref, w8_ref, b8_ref,
    out_ref,
):
    def linear(h, w_ref, b_ref):
        # MXU matmul in the weights' dtype (bf16 fast path), f32 accumulation,
        # f32 bias add so all element-wise math stays f32 (v5e-safe).
        return (
            jnp.dot(h.astype(w_ref.dtype), w_ref[...],
                    preferred_element_type=jnp.float32)
            + b_ref[...]
        )

    h = x_ref[...]

    # ---- encoder ----
    h = jnp.maximum(linear(h, w1_ref, b1_ref), 0.0)   # F   -> 80 (padded 128), ReLU
    h = jnp.maximum(linear(h, w2_ref, b2_ref), 0.0)   # 80  -> 40, ReLU
    h = jnp.maximum(linear(h, w3_ref, b3_ref), 0.0)   # 40  -> 20, ReLU
    h = linear(h, w4_ref, b4_ref)                     # 20  -> 10 (no activation)

    # ---- decoder ----
    h = jnp.maximum(linear(h, w5_ref, b5_ref), 0.0)   # 10  -> 20, ReLU
    h = jnp.maximum(linear(h, w6_ref, b6_ref), 0.0)   # 20  -> 40, ReLU
    h = jnp.maximum(linear(h, w7_ref, b7_ref), 0.0)   # 40  -> 80, ReLU
    z = linear(h, w8_ref, b8_ref)                     # 80  -> F

    # Sigmoid: exp (EUP) + approx reciprocal (EUP) -> VALU-free epilogue.
    out_ref[...] = pl.reciprocal(1.0 + jnp.exp(-z), approx=True).astype(out_ref.dtype)


# ----------------------------------------------------------------------------
# Wrapper
# ----------------------------------------------------------------------------
def _choose_tile_b(batch_padded):
    """Largest batch tile that keeps >= 2 grid steps (v7x has 2 TensorCores)."""
    if batch_padded // 2 >= 8:
        return min(512, _round_up(batch_padded // 2, 8))
    return batch_padded


def autoencoder_forward(x, params, *, tile_b=None, matmul_dtype=jnp.bfloat16):
    """x: (B, F) f32; params: list of 8 (W_(in,out), b_(1,out)) f32 pairs."""
    B, F = x.shape

    # --- pad every feature dim up to a multiple of 128 (lane-dense) ----------
    dims = [F] + [w.shape[1] for w, _ in params]      # [F,80,40,20,10,20,40,80,F]
    pdims = [_round_up(d, 128) for d in dims]
    Fp = pdims[0]

    flat_params = []
    for li, (w, b) in enumerate(params):
        wp = _pad2d(w, pdims[li], pdims[li + 1]).astype(matmul_dtype)
        bp = _pad2d(b, 1, pdims[li + 1]).astype(jnp.float32)
        flat_params.extend([wp, bp])

    # --- pad / tile the batch dim --------------------------------------------
    if tile_b is None:
        tile_b = _choose_tile_b(_round_up(B, 8))
    Bp = _round_up(B, tile_b)
    xp = _pad2d(x, Bp, Fp).astype(matmul_dtype)   # bf16 x halves input HBM traffic

    grid = (Bp // tile_b,)
    x_spec = pl.BlockSpec((tile_b, Fp), lambda i: (i, 0))
    out_spec = pl.BlockSpec((tile_b, Fp), lambda i: (i, 0))
    # Tiny weights/biases: full-array blocks, constant index_map -> DMA'd once,
    # VMEM-resident across all grid steps.
    param_specs = [pl.BlockSpec(p.shape, lambda i: (0, 0)) for p in flat_params]

    cost = pl.CostEstimate(
        flops=2 * B * sum(w.shape[0] * w.shape[1] for w, _ in params),
        transcendentals=B * F,
        bytes_accessed=(xp.size * xp.dtype.itemsize
                        + Bp * Fp * 4
                        + sum(p.size * p.dtype.itemsize for p in flat_params)),
    )

    fn = pl.pallas_call(
        autoencoder_kernel,
        out_shape=jax.ShapeDtypeStruct((Bp, Fp), jnp.float32),
        grid_spec=pltpu.PrefetchScalarGridSpec(
            num_scalar_prefetch=0,
            grid=grid,
            in_specs=[x_spec] + param_specs,
            out_specs=out_spec,
        ),
        compiler_params=pltpu.CompilerParams(
            dimension_semantics=("parallel",),      # megacore split on v7x
            vmem_limit_bytes=32 * 1024 * 1024,      # headroom for big tiles (v5e default 16 MiB)
        ),
        cost_estimate=cost,
    )
    out_padded = fn(xp, *flat_params)
    return out_padded[:B, :F]


# ----------------------------------------------------------------------------
# Deterministic parameter initialization (PyTorch nn.Linear-style uniform)
# ----------------------------------------------------------------------------
def init_params(key, in_features):
    dims = [in_features, 80, 40, 20, 10, 20, 40, 80, in_features]
    params = []
    for i in range(len(dims) - 1):
        fan_in, fan_out = dims[i], dims[i + 1]
        key, kw, kb = jax.random.split(key, 3)
        bound = 1.0 / (fan_in ** 0.5)
        # stored as (in, out) so kernel computes h @ W (== PyTorch x @ W.T)
        w = jax.random.uniform(kw, (fan_in, fan_out), jnp.float32,
                               minval=-bound, maxval=bound)
        b = jax.random.uniform(kb, (1, fan_out), jnp.float32,
                               minval=-bound, maxval=bound)
        params.append((w, b))
    return params


# Pure-JAX reference (matmul_dtype lets us mirror the kernel's bf16 MXU policy).
def reference_forward(x, params, matmul_dtype=jnp.float32):
    h = x
    n = len(params)
    for idx, (w, b) in enumerate(params):
        h = jnp.dot(h.astype(matmul_dtype), w.astype(matmul_dtype),
                    preferred_element_type=jnp.float32) + b
        if idx == n - 1:
            h = jax.nn.sigmoid(h)
        elif idx != 3:  # layer 4 (encoder output, 20->10) has no activation
            h = jnp.maximum(h, 0.0)
    return h


if __name__ == "__main__":
    key = jax.random.PRNGKey(0)
    B, F = 16, 32  # batch=16, input feature dim (X.shape[1]) = 32

    key, kx = jax.random.split(key)
    x = jax.random.normal(kx, (B, F), dtype=jnp.float32)
    params = init_params(key, F)

    out = autoencoder_forward(x, params)
    out = jax.block_until_ready(out)
    assert out.shape == (B, F)

    # Matched-precision reference (bf16 matmul operands, f32 everything else);
    # the only remaining deltas are accumulation order and the approx EUP
    # reciprocal inside the sigmoid.
    ref = reference_forward(x, params, matmul_dtype=jnp.bfloat16)
    assert jnp.allclose(out, ref, atol=1e-2, rtol=1e-2), "mismatch vs reference"

    print("KERNEL_OK")
</pallas_src>

<mosaic_0001>
module attributes {stable_mosaic.version = 11 : i64} {
  func.func @autoencoder_kernel(%arg0: i32, %arg1: memref<8x128xbf16, #tpu.memory_space<vmem>>, %arg2: memref<128x128xbf16, #tpu.memory_space<vmem>>, %arg3: memref<1x128xf32, #tpu.memory_space<vmem>>, %arg4: memref<128x128xbf16, #tpu.memory_space<vmem>>, %arg5: memref<1x128xf32, #tpu.memory_space<vmem>>, %arg6: memref<128x128xbf16, #tpu.memory_space<vmem>>, %arg7: memref<1x128xf32, #tpu.memory_space<vmem>>, %arg8: memref<128x128xbf16, #tpu.memory_space<vmem>>, %arg9: memref<1x128xf32, #tpu.memory_space<vmem>>, %arg10: memref<128x128xbf16, #tpu.memory_space<vmem>>, %arg11: memref<1x128xf32, #tpu.memory_space<vmem>>, %arg12: memref<128x128xbf16, #tpu.memory_space<vmem>>, %arg13: memref<1x128xf32, #tpu.memory_space<vmem>>, %arg14: memref<128x128xbf16, #tpu.memory_space<vmem>>, %arg15: memref<1x128xf32, #tpu.memory_space<vmem>>, %arg16: memref<128x128xbf16, #tpu.memory_space<vmem>>, %arg17: memref<1x128xf32, #tpu.memory_space<vmem>>, %arg18: memref<8x128xf32, #tpu.memory_space<vmem>>) attributes {dimension_semantics = [#tpu.dimension_semantics<parallel>], iteration_bounds = array<i64: 2>, scalar_prefetch = 0 : i64, scratch_operands = 0 : i64, tpu.core_type = #tpu.core_type<tc>, window_params = [{transform_indices = @transform_0, window_bounds = array<i64: 8, 128>}, {pipeline_mode = #tpu.pipeline_mode<synchronous>, transform_indices = @transform_1, window_bounds = array<i64: 128, 128>}, {pipeline_mode = #tpu.pipeline_mode<synchronous>, transform_indices = @transform_2, window_bounds = array<i64: 1, 128>}, {pipeline_mode = #tpu.pipeline_mode<synchronous>, transform_indices = @transform_3, window_bounds = array<i64: 128, 128>}, {pipeline_mode = #tpu.pipeline_mode<synchronous>, transform_indices = @transform_4, window_bounds = array<i64: 1, 128>}, {pipeline_mode = #tpu.pipeline_mode<synchronous>, transform_indices = @transform_5, window_bounds = array<i64: 128, 128>}, {pipeline_mode = #tpu.pipeline_mode<synchronous>, transform_indices = @transform_6, window_bounds = array<i64: 1, 128>}, {pipeline_mode = #tpu.pipeline_mode<synchronous>, transform_indices = @transform_7, window_bounds = array<i64: 128, 128>}, {pipeline_mode = #tpu.pipeline_mode<synchronous>, transform_indices = @transform_8, window_bounds = array<i64: 1, 128>}, {pipeline_mode = #tpu.pipeline_mode<synchronous>, transform_indices = @transform_9, window_bounds = array<i64: 128, 128>}, {pipeline_mode = #tpu.pipeline_mode<synchronous>, transform_indices = @transform_10, window_bounds = array<i64: 1, 128>}, {pipeline_mode = #tpu.pipeline_mode<synchronous>, transform_indices = @transform_11, window_bounds = array<i64: 128, 128>}, {pipeline_mode = #tpu.pipeline_mode<synchronous>, transform_indices = @transform_12, window_bounds = array<i64: 1, 128>}, {pipeline_mode = #tpu.pipeline_mode<synchronous>, transform_indices = @transform_13, window_bounds = array<i64: 128, 128>}, {pipeline_mode = #tpu.pipeline_mode<synchronous>, transform_indices = @transform_14, window_bounds = array<i64: 1, 128>}, {pipeline_mode = #tpu.pipeline_mode<synchronous>, transform_indices = @transform_15, window_bounds = array<i64: 128, 128>}, {pipeline_mode = #tpu.pipeline_mode<synchronous>, transform_indices = @transform_16, window_bounds = array<i64: 1, 128>}, {transform_indices = @transform_17, window_bounds = array<i64: 8, 128>}]} {
    %c0 = arith.constant 0 : index
    %c0_0 = arith.constant 0 : index
    %0 = vector.load %arg1[%c0, %c0_0] : memref<8x128xbf16, #tpu.memory_space<vmem>>, vector<8x128xbf16>
    %c0_1 = arith.constant 0 : index
    %c0_2 = arith.constant 0 : index
    %1 = vector.load %arg2[%c0_1, %c0_2] : memref<128x128xbf16, #tpu.memory_space<vmem>>, vector<128x128xbf16>
    %cst = arith.constant dense<0.000000e+00> : vector<8x128xf32>
    %2 = tpu.matmul %0, %1, %cst {dimension_numbers = #tpu.dot_dimension_numbers<[1], [0], [0], [1], [0, 0, 1, 1], [], []>} : vector<8x128xbf16>, vector<128x128xbf16>, vector<8x128xf32> -> vector<8x128xf32>
    %c0_3 = arith.constant 0 : index
    %c0_4 = arith.constant 0 : index
    %3 = vector.load %arg3[%c0_3, %c0_4] : memref<1x128xf32, #tpu.memory_space<vmem>>, vector<1x128xf32>
    %4 = vector.broadcast %3 : vector<1x128xf32> to vector<8x128xf32>
    %5 = arith.addf %2, %4 : vector<8x128xf32>
    %cst_5 = arith.constant 0.000000e+00 : f32
    %6 = vector.broadcast %cst_5 : f32 to vector<8x128xf32>
    %7 = arith.maximumf %5, %6 : vector<8x128xf32>
    %8 = arith.truncf %7 : vector<8x128xf32> to vector<8x128xbf16>
    %c0_6 = arith.constant 0 : index
    %c0_7 = arith.constant 0 : index
    %9 = vector.load %arg4[%c0_6, %c0_7] : memref<128x128xbf16, #tpu.memory_space<vmem>>, vector<128x128xbf16>
    %cst_8 = arith.constant dense<0.000000e+00> : vector<8x128xf32>
    %10 = tpu.matmul %8, %9, %cst_8 {dimension_numbers = #tpu.dot_dimension_numbers<[1], [0], [0], [1], [0, 0, 1, 1], [], []>} : vector<8x128xbf16>, vector<128x128xbf16>, vector<8x128xf32> -> vector<8x128xf32>
    %c0_9 = arith.constant 0 : index
    %c0_10 = arith.constant 0 : index
    %11 = vector.load %arg5[%c0_9, %c0_10] : memref<1x128xf32, #tpu.memory_space<vmem>>, vector<1x128xf32>
    %12 = vector.broadcast %11 : vector<1x128xf32> to vector<8x128xf32>
    %13 = arith.addf %10, %12 : vector<8x128xf32>
    %cst_11 = arith.constant 0.000000e+00 : f32
    %14 = vector.broadcast %cst_11 : f32 to vector<8x128xf32>
    %15 = arith.maximumf %13, %14 : vector<8x128xf32>
    %16 = arith.truncf %15 : vector<8x128xf32> to vector<8x128xbf16>
    %c0_12 = arith.constant 0 : index
    %c0_13 = arith.constant 0 : index
    %17 = vector.load %arg6[%c0_12, %c0_13] : memref<128x128xbf16, #tpu.memory_space<vmem>>, vector<128x128xbf16>
    %cst_14 = arith.constant dense<0.000000e+00> : vector<8x128xf32>
    %18 = tpu.matmul %16, %17, %cst_14 {dimension_numbers = #tpu.dot_dimension_numbers<[1], [0], [0], [1], [0, 0, 1, 1], [], []>} : vector<8x128xbf16>, vector<128x128xbf16>, vector<8x128xf32> -> vector<8x128xf32>
    %c0_15 = arith.constant 0 : index
    %c0_16 = arith.constant 0 : index
    %19 = vector.load %arg7[%c0_15, %c0_16] : memref<1x128xf32, #tpu.memory_space<vmem>>, vector<1x128xf32>
    %20 = vector.broadcast %19 : vector<1x128xf32> to vector<8x128xf32>
    %21 = arith.addf %18, %20 : vector<8x128xf32>
    %cst_17 = arith.constant 0.000000e+00 : f32
    %22 = vector.broadcast %cst_17 : f32 to vector<8x128xf32>
    %23 = arith.maximumf %21, %22 : vector<8x128xf32>
    %24 = arith.truncf %23 : vector<8x128xf32> to vector<8x128xbf16>
    %c0_18 = arith.constant 0 : index
    %c0_19 = arith.constant 0 : index
    %25 = vector.load %arg8[%c0_18, %c0_19] : memref<128x128xbf16, #tpu.memory_space<vmem>>, vector<128x128xbf16>
    %cst_20 = arith.constant dense<0.000000e+00> : vector<8x128xf32>
    %26 = tpu.matmul %24, %25, %cst_20 {dimension_numbers = #tpu.dot_dimension_numbers<[1], [0], [0], [1], [0, 0, 1, 1], [], []>} : vector<8x128xbf16>, vector<128x128xbf16>, vector<8x128xf32> -> vector<8x128xf32>
    %c0_21 = arith.constant 0 : index
    %c0_22 = arith.constant 0 : index
    %27 = vector.load %arg9[%c0_21, %c0_22] : memref<1x128xf32, #tpu.memory_space<vmem>>, vector<1x128xf32>
    %28 = vector.broadcast %27 : vector<1x128xf32> to vector<8x128xf32>
    %29 = arith.addf %26, %28 : vector<8x128xf32>
    %30 = arith.truncf %29 : vector<8x128xf32> to vector<8x128xbf16>
    %c0_23 = arith.constant 0 : index
    %c0_24 = arith.constant 0 : index
    %31 = vector.load %arg10[%c0_23, %c0_24] : memref<128x128xbf16, #tpu.memory_space<vmem>>, vector<128x128xbf16>
    %cst_25 = arith.constant dense<0.000000e+00> : vector<8x128xf32>
    %32 = tpu.matmul %30, %31, %cst_25 {dimension_numbers = #tpu.dot_dimension_numbers<[1], [0], [0], [1], [0, 0, 1, 1], [], []>} : vector<8x128xbf16>, vector<128x128xbf16>, vector<8x128xf32> -> vector<8x128xf32>
    %c0_26 = arith.constant 0 : index
    %c0_27 = arith.constant 0 : index
    %33 = vector.load %arg11[%c0_26, %c0_27] : memref<1x128xf32, #tpu.memory_space<vmem>>, vector<1x128xf32>
    %34 = vector.broadcast %33 : vector<1x128xf32> to vector<8x128xf32>
    %35 = arith.addf %32, %34 : vector<8x128xf32>
    %cst_28 = arith.constant 0.000000e+00 : f32
    %36 = vector.broadcast %cst_28 : f32 to vector<8x128xf32>
    %37 = arith.maximumf %35, %36 : vector<8x128xf32>
    %38 = arith.truncf %37 : vector<8x128xf32> to vector<8x128xbf16>
    %c0_29 = arith.constant 0 : index
    %c0_30 = arith.constant 0 : index
    %39 = vector.load %arg12[%c0_29, %c0_30] : memref<128x128xbf16, #tpu.memory_space<vmem>>, vector<128x128xbf16>
    %cst_31 = arith.constant dense<0.000000e+00> : vector<8x128xf32>
    %40 = tpu.matmul %38, %39, %cst_31 {dimension_numbers = #tpu.dot_dimension_numbers<[1], [0], [0], [1], [0, 0, 1, 1], [], []>} : vector<8x128xbf16>, vector<128x128xbf16>, vector<8x128xf32> -> vector<8x128xf32>
    %c0_32 = arith.constant 0 : index
    %c0_33 = arith.constant 0 : index
    %41 = vector.load %arg13[%c0_32, %c0_33] : memref<1x128xf32, #tpu.memory_space<vmem>>, vector<1x128xf32>
    %42 = vector.broadcast %41 : vector<1x128xf32> to vector<8x128xf32>
    %43 = arith.addf %40, %42 : vector<8x128xf32>
    %cst_34 = arith.constant 0.000000e+00 : f32
    %44 = vector.broadcast %cst_34 : f32 to vector<8x128xf32>
    %45 = arith.maximumf %43, %44 : vector<8x128xf32>
    %46 = arith.truncf %45 : vector<8x128xf32> to vector<8x128xbf16>
    %c0_35 = arith.constant 0 : index
    %c0_36 = arith.constant 0 : index
    %47 = vector.load %arg14[%c0_35, %c0_36] : memref<128x128xbf16, #tpu.memory_space<vmem>>, vector<128x128xbf16>
    %cst_37 = arith.constant dense<0.000000e+00> : vector<8x128xf32>
    %48 = tpu.matmul %46, %47, %cst_37 {dimension_numbers = #tpu.dot_dimension_numbers<[1], [0], [0], [1], [0, 0, 1, 1], [], []>} : vector<8x128xbf16>, vector<128x128xbf16>, vector<8x128xf32> -> vector<8x128xf32>
    %c0_38 = arith.constant 0 : index
    %c0_39 = arith.constant 0 : index
    %49 = vector.load %arg15[%c0_38, %c0_39] : memref<1x128xf32, #tpu.memory_space<vmem>>, vector<1x128xf32>
    %50 = vector.broadcast %49 : vector<1x128xf32> to vector<8x128xf32>
    %51 = arith.addf %48, %50 : vector<8x128xf32>
    %cst_40 = arith.constant 0.000000e+00 : f32
    %52 = vector.broadcast %cst_40 : f32 to vector<8x128xf32>
    %53 = arith.maximumf %51, %52 : vector<8x128xf32>
    %54 = arith.truncf %53 : vector<8x128xf32> to vector<8x128xbf16>
    %c0_41 = arith.constant 0 : index
    %c0_42 = arith.constant 0 : index
    %55 = vector.load %arg16[%c0_41, %c0_42] : memref<128x128xbf16, #tpu.memory_space<vmem>>, vector<128x128xbf16>
    %cst_43 = arith.constant dense<0.000000e+00> : vector<8x128xf32>
    %56 = tpu.matmul %54, %55, %cst_43 {dimension_numbers = #tpu.dot_dimension_numbers<[1], [0], [0], [1], [0, 0, 1, 1], [], []>} : vector<8x128xbf16>, vector<128x128xbf16>, vector<8x128xf32> -> vector<8x128xf32>
    %c0_44 = arith.constant 0 : index
    %c0_45 = arith.constant 0 : index
    %57 = vector.load %arg17[%c0_44, %c0_45] : memref<1x128xf32, #tpu.memory_space<vmem>>, vector<1x128xf32>
    %58 = vector.broadcast %57 : vector<1x128xf32> to vector<8x128xf32>
    %59 = arith.addf %56, %58 : vector<8x128xf32>
    %cst_46 = arith.constant 0.000000e+00 : f32
    %60 = vector.broadcast %cst_46 : f32 to vector<8x128xf32>
    %61 = arith.subf %60, %59 : vector<8x128xf32>
    %62 = math.exp %61 : vector<8x128xf32>
    %cst_47 = arith.constant 1.000000e+00 : f32
    %63 = vector.broadcast %cst_47 : f32 to vector<8x128xf32>
    %64 = arith.addf %63, %62 : vector<8x128xf32>
    %65 = tpu.reciprocal %64 {approx = true} : vector<8x128xf32> -> vector<8x128xf32>
    %c0_48 = arith.constant 0 : index
    %c0_49 = arith.constant 0 : index
    %66 = vector.load %arg18[%c0_48, %c0_49] : memref<8x128xf32, #tpu.memory_space<vmem>>, vector<8x128xf32>
    tpu.vector_store %arg18[%c0_48, %c0_49], %65 {strides = array<i32>} : memref<8x128xf32, #tpu.memory_space<vmem>>, vector<8x128xf32>,
    return
  }
  func.func @transform_0(%arg0: i32) -> (i32, i32) {
    %c0_i32 = arith.constant 0 : i32
    %c0_i32_0 = arith.constant 0 : i32
    return %arg0, %c0_i32 : i32, i32
  }
  func.func @transform_1(%arg0: i32) -> (i32, i32) {
    %c0_i32 = arith.constant 0 : i32
    %c0_i32_0 = arith.constant 0 : i32
    %c0_i32_1 = arith.constant 0 : i32
    return %c0_i32, %c0_i32_0 : i32, i32
  }
  func.func @transform_2(%arg0: i32) -> (i32, i32) {
    %c0_i32 = arith.constant 0 : i32
    %c0_i32_0 = arith.constant 0 : i32
    %c0_i32_1 = arith.constant 0 : i32
    return %c0_i32, %c0_i32_0 : i32, i32
  }
  func.func @transform_3(%arg0: i32) -> (i32, i32) {
    %c0_i32 = arith.constant 0 : i32
    %c0_i32_0 = arith.constant 0 : i32
    %c0_i32_1 = arith.constant 0 : i32
    return %c0_i32, %c0_i32_0 : i32, i32
  }
  func.func @transform_4(%arg0: i32) -> (i32, i32) {
    %c0_i32 = arith.constant 0 : i32
    %c0_i32_0 = arith.constant 0 : i32
    %c0_i32_1 = arith.constant 0 : i32
    return %c0_i32, %c0_i32_0 : i32, i32
  }
  func.func @transform_5(%arg0: i32) -> (i32, i32) {
    %c0_i32 = arith.constant 0 : i32
    %c0_i32_0 = arith.constant 0 : i32
    %c0_i32_1 = arith.constant 0 : i32
    return %c0_i32, %c0_i32_0 : i32, i32
  }
  func.func @transform_6(%arg0: i32) -> (i32, i32) {
    %c0_i32 = arith.constant 0 : i32
    %c0_i32_0 = arith.constant 0 : i32
    %c0_i32_1 = arith.constant 0 : i32
    return %c0_i32, %c0_i32_0 : i32, i32
  }
  func.func @transform_7(%arg0: i32) -> (i32, i32) {
    %c0_i32 = arith.constant 0 : i32
    %c0_i32_0 = arith.constant 0 : i32
    %c0_i32_1 = arith.constant 0 : i32
    return %c0_i32, %c0_i32_0 : i32, i32
  }
  func.func @transform_8(%arg0: i32) -> (i32, i32) {
    %c0_i32 = arith.constant 0 : i32
    %c0_i32_0 = arith.constant 0 : i32
    %c0_i32_1 = arith.constant 0 : i32
    return %c0_i32, %c0_i32_0 : i32, i32
  }
  func.func @transform_9(%arg0: i32) -> (i32, i32) {
    %c0_i32 = arith.constant 0 : i32
    %c0_i32_0 = arith.constant 0 : i32
    %c0_i32_1 = arith.constant 0 : i32
    return %c0_i32, %c0_i32_0 : i32, i32
  }
  func.func @transform_10(%arg0: i32) -> (i32, i32) {
    %c0_i32 = arith.constant 0 : i32
    %c0_i32_0 = arith.constant 0 : i32
    %c0_i32_1 = arith.constant 0 : i32
    return %c0_i32, %c0_i32_0 : i32, i32
  }
  func.func @transform_11(%arg0: i32) -> (i32, i32) {
    %c0_i32 = arith.constant 0 : i32
    %c0_i32_0 = arith.constant 0 : i32
    %c0_i32_1 = arith.constant 0 : i32
    return %c0_i32, %c0_i32_0 : i32, i32
  }
  func.func @transform_12(%arg0: i32) -> (i32, i32) {
    %c0_i32 = arith.constant 0 : i32
    %c0_i32_0 = arith.constant 0 : i32
    %c0_i32_1 = arith.constant 0 : i32
    return %c0_i32, %c0_i32_0 : i32, i32
  }
  func.func @transform_13(%arg0: i32) -> (i32, i32) {
    %c0_i32 = arith.constant 0 : i32
    %c0_i32_0 = arith.constant 0 : i32
    %c0_i32_1 = arith.constant 0 : i32
    return %c0_i32, %c0_i32_0 : i32, i32
  }
  func.func @transform_14(%arg0: i32) -> (i32, i32) {
    %c0_i32 = arith.constant 0 : i32
    %c0_i32_0 = arith.constant 0 : i32
    %c0_i32_1 = arith.constant 0 : i32
    return %c0_i32, %c0_i32_0 : i32, i32
  }
  func.func @transform_15(%arg0: i32) -> (i32, i32) {
    %c0_i32 = arith.constant 0 : i32
    %c0_i32_0 = arith.constant 0 : i32
    %c0_i32_1 = arith.constant 0 : i32
    return %c0_i32, %c0_i32_0 : i32, i32
  }
  func.func @transform_16(%arg0: i32) -> (i32, i32) {
    %c0_i32 = arith.constant 0 : i32
    %c0_i32_0 = arith.constant 0 : i32
    %c0_i32_1 = arith.constant 0 : i32
    return %c0_i32, %c0_i32_0 : i32, i32
  }
  func.func @transform_17(%arg0: i32) -> (i32, i32) {
    %c0_i32 = arith.constant 0 : i32
    %c0_i32_0 = arith.constant 0 : i32
    return %arg0, %c0_i32 : i32, i32
  }
}

</mosaic_0001>

<bundles_post_ra>
// kernel: tpu_custom_call.1
= control target key start
LH: loop header
LB: loop body
LE: loop exit
PB: predicated region body
PF: predicated region fallthrough
CT: control target
= control target key end

     0   :  { %s3214_s0 = inlined_call_operand.hbm [shape: bf16[16,128], index: 0, kind: input, shape index: {}]   ;;  %s3215_s1 = inlined_call_operand.hbm [shape: bf16[128,128], index: 1, kind: input, shape index: {}]   ;;  %s3216_s2 = inlined_call_operand.vmem [shape: f32[1,128], index: 2, kind: input, shape index: {}]   ;;  %s3217_s3 = inlined_call_operand.hbm [shape: bf16[128,128], index: 3, kind: input, shape index: {}]   ;;  %s3218_s4 = inlined_call_operand.vmem [shape: f32[1,128], index: 4, kind: input, shape index: {}]   ;;  %s3219_s5 = inlined_call_operand.hbm [shape: bf16[128,128], index: 5, kind: input, shape index: {}]   ;;  %s3220_s6 = inlined_call_operand.vmem [shape: f32[1,128], index: 6, kind: input, shape index: {}]   ;;  %s3221_s7 = inlined_call_operand.hbm [shape: bf16[128,128], index: 7, kind: input, shape index: {}]   ;;  %s3222_s8 = inlined_call_operand.vmem [shape: f32[1,128], index: 8, kind: input, shape index: {}]   ;;  %s3223_s9 = inlined_call_operand.hbm [shape: bf16[128,128], index: 9, kind: input, shape index: {}]   ;;  %s3224_s10 = inlined_call_operand.vmem [shape: f32[1,128], index: 10, kind: input, shape index: {}]   ;;  %s3225_s11 = inlined_call_operand.hbm [shape: bf16[128,128], index: 11, kind: input, shape index: {}]   ;;  %s3226_s12 = inlined_call_operand.vmem [shape: f32[1,128], index: 12, kind: input, shape index: {}]   ;;  %s3227_s13 = inlined_call_operand.hbm [shape: bf16[128,128], index: 13, kind: input, shape index: {}]   ;;  %s3228_s14 = inlined_call_operand.vmem [shape: f32[1,128], index: 14, kind: input, shape index: {}]   ;;  %s3229_s15 = inlined_call_operand.hbm [shape: bf16[128,128], index: 15, kind: input, shape index: {}]   ;;  %s3230_s16 = inlined_call_operand.vmem [shape: f32[1,128], index: 16, kind: input, shape index: {}]   ;;  %s3231_s17 = inlined_call_operand.hbm [shape: f32[16,128], index: 17, kind: output, shape index: {}]  }
   0x1   :  { %3238 = sst [smem:[#allocation24_spill]] %s3214_s0 }
   0x2   :  { %3239 = sst [smem:[#allocation25_spill]] %s3215_s1 }
   0x3   :  { %3240 = sst [smem:[#allocation26_spill]] %s3217_s3 }
   0x4   :  { %3241 = sst [smem:[#allocation27_spill]] %s3218_s4 }
   0x5   :  { %3242 = sst [smem:[#allocation28_spill]] %s3219_s5 }
   0x6   :  { %3243 = sst [smem:[#allocation29_spill]] %s3220_s6 }
   0x7   :  { %3244 = sst [smem:[#allocation30_spill]] %s3222_s8 }
   0x8   :  { %3245 = sst [smem:[#allocation31_spill]] %s3224_s10 }
   0x9   :  { %3246 = sst [smem:[#allocation32_spill]] %s3226_s12 }
   0xa   :  { %3247 = sst [smem:[#allocation33_spill]] %s3228_s14 }
   0xb   :  { %3248 = sst [smem:[#allocation34_spill]] %s3230_s16 }
   0xc   :  { %3249 = sst [smem:[#allocation35_spill]] %s3231_s17 }
   0xd   :  { %22 = vsyncpa [#allocation3], 0 }
   0xe   :  { %24 = vsyncpa [#allocation3 + $0x1], 0 }
   0xf   :  { %25 = vsyncpa [#allocation6], 0 }
  0x10   :  { %26 = vsyncpa [#allocation9], 0 }
  0x11   :  { %27 = vsyncpa [#allocation12], 0 }
  0x12   :  { %28 = vsyncpa [#allocation15], 0 }
  0x13   :  { %29 = vsyncpa [#allocation4], 0 }
  0x14   :  { %31 = vsyncpa [#allocation4 + $0x1], 0  ;;  %s2722_s24 = smov 0   ;;  %s2724_s25 = smov 0  }
  0x15   :  { %s2726_s26 = smov 0   ;;  %s2728_s27 = smov 0  }
  0x16 LB: > { %s2618_s28 = smov [#allocation5]   ;;  %s2743_s0 = sadd.s32 4294967295, %s2616_s27   ;;  %s2616_s27 = sphi %s2728_s27, %s3286_s27   ;;  %s2612_s26 = sphi %s2726_s26, %s3285_s26   ;;  %s2608_s25 = sphi %s2724_s25, %s3284_s25   ;;  %s2604_s24 = sphi %s2722_s24, %s3283_s24  }
  0x17   : > { %s442_s29 = sshll.u32 %s2618_s28, 4  ;;  %p1750_p0 = scmp.ge.s32.totalorder %s2616_s27, 1  ;;  %s2748_s29 = int_to_ptr.vmem [resolvable:$true] %s442_s29 }
  0x18   : > { %p3235_p1 = scmp.eq.s32.totalorder %s2743_s0, 0  ;;  %p430_p2 = scmp.lt.s32.totalorder %s2616_s27, 3 }
  0x19   : > { %s2619_s18 = smov [#allocation8]   ;;  %s2620_s20 = smov [#allocation11]  }
  0x1a   : > { %p2750_p3 = pnand %p1750_p0, %p430_p2  ;;  %s474_s19 = sshll.u32 %s2619_s18, 4  ;;  %s2763_s19 = int_to_ptr.vmem [resolvable:$true] %s474_s19 }
  0x1b   : > { %s506_s21 = sshll.u32 %s2620_s20, 4  ;;  %s3252_s28 = sld [smem:[#allocation25_spill]]  ;;  %s2765_s21 = int_to_ptr.vmem [resolvable:$true] %s506_s21 }
  0x1c   : > { %s3250_s30 = scalar_select %p2750_p3, 1, 0 }
  0x1d   : > { %p2117_p5 = pneg %p2750_p3 }
  0x1f   : > { %p2759_p6 = pnand %p2117_p5, %p3235_p1 }
  0x21   : > { %s2280_s17 = scalar_lea.hbm %s3252_s28, 1024  ;;  %p2775_p8 = pneg %p2759_p6 }
  0x22   : > { %p2281_p7 = scmp.ne.s32.totalorder %s3252_s28, %s2280_s17  ;;  %p2287_p11 = scmp.lt.u32.totalorder %s2280_s17, %s3252_s28 }
  0x24   : > { %p2283_p9 = pnand %p2775_p8, %p2281_p7 }
  0x26   : > { %p2284_p10 = pneg %p2283_p9 }
  0x28   : > { %p2289_p12 = pnand %p2287_p11, %p2284_p10 }
  0x2a   : > { %2292 = shalt.err (!%p2289_p12)
}
  0x2b   : > { %s2293_s14 = scalar_lea.vmem %s2748_s29, 1024  ;;  %p2301_p5 = scmp.lt.s32.totalorder %s2748_s29, %s2748_s29 }
  0x2c   : > { %p2294_p13 = scmp.ne.s32.totalorder %s2748_s29, %s2293_s14  ;;  %p2302_p4 = scmp.lt.s32.totalorder %s2293_s14, %s2293_s14 }
  0x2e   : > { %p2296_p0 = pnand %p2294_p13, %p2775_p8  ;;  %p2303_p7 = por %p2302_p4, %p2301_p5 }
  0x30   : > { %p2297_p2 = pneg %p2296_p0 }
  0x32   : > { %p2304_p9 = pnand %p2303_p7, %p2297_p2 }
  0x34   : > { %2307 = shalt.err (!%p2304_p9)
}
  0x35   : > { %s2621_s16 = smov 64   ;;  %s2622_s12 = smov 4  }
  0x36   : > { %2120 = dma.hbm_to_vmem [thread:$0]  (!%p2759_p6), %s3252_s28, 1024, %s2748_s29, [#allocation6], %s2621_s16, %s2621_s16, %s2622_s12  }
  0x37   : > { %s3254_s5 = sld [smem:[#allocation28_spill]] }
  0x3d   : > { %s2308_s14 = scalar_lea.hbm %s3254_s5, 1024 }
  0x3e   : > { %p2309_p4 = scmp.ne.s32.totalorder %s3254_s5, %s2308_s14  ;;  %p2315_p12 = scmp.lt.u32.totalorder %s2308_s14, %s3254_s5 }
  0x40   : > { %p2311_p10 = pnand %p2309_p4, %p2775_p8 }
  0x42   : > { %p2312_p11 = pneg %p2311_p10 }
  0x44   : > { %p2317_p13 = pnand %p2315_p12, %p2312_p11 }
  0x46   : > { %2320 = shalt.err (!%p2317_p13)
}
  0x47   : > { %s2321_s29 = scalar_lea.vmem %s2763_s19, 1024  ;;  %p2329_p7 = scmp.lt.s32.totalorder %s2763_s19, %s2763_s19 }
  0x48   : > { %p2322_p0 = scmp.ne.s32.totalorder %s2763_s19, %s2321_s29  ;;  %p2330_p9 = scmp.lt.s32.totalorder %s2321_s29, %s2321_s29 }
  0x4a   : > { %p2324_p2 = pnand %p2322_p0, %p2775_p8  ;;  %p2331_p4 = por %p2330_p9, %p2329_p7 }
  0x4c   : > { %p2325_p5 = pneg %p2324_p2 }
  0x4e   : > { %p2332_p10 = pnand %p2331_p4, %p2325_p5 }
  0x50   : > { %2335 = shalt.err (!%p2332_p10)
}
  0x51   : > { %2126 = dma.hbm_to_vmem [thread:$0]  (!%p2759_p6), %s3254_s5, 1024, %s2763_s19, [#allocation9], %s2621_s16, %s2621_s16, %s2622_s12  }
  0x52   : > { %s2336_s17 = scalar_lea.hbm %s3223_s9, 1024 }
  0x53   : > { %p2337_p11 = scmp.ne.s32.totalorder %s3223_s9, %s2336_s17  ;;  %p2343_p0 = scmp.lt.u32.totalorder %s2336_s17, %s3223_s9 }
  0x55   : > { %p2339_p12 = pnand %p2337_p11, %p2775_p8 }
  0x57   : > { %p2340_p13 = pneg %p2339_p12 }
  0x59   : > { %p2345_p2 = pnand %p2343_p0, %p2340_p13 }
  0x5b   : > { %2348 = shalt.err (!%p2345_p2)
}
  0x5c   : > { %s2349_s19 = scalar_lea.vmem %s2765_s21, 1024  ;;  %p2357_p4 = scmp.lt.s32.totalorder %s2765_s21, %s2765_s21 }
  0x5d   : > { %p2350_p5 = scmp.ne.s32.totalorder %s2765_s21, %s2349_s19  ;;  %p2358_p10 = scmp.lt.s32.totalorder %s2349_s19, %s2349_s19 }
  0x5f   : > { %p2352_p7 = pnand %p2350_p5, %p2775_p8  ;;  %p2359_p11 = por %p2358_p10, %p2357_p4 }
  0x61   : > { %p2353_p9 = pneg %p2352_p7 }
  0x63   : > { %p2360_p12 = pnand %p2359_p11, %p2353_p9 }
  0x65   : > { %2363 = shalt.err (!%p2360_p12)
}
  0x66   : > { %2132 = dma.hbm_to_vmem [thread:$0]  (!%p2759_p6), %s3223_s9, 1024, %s2765_s21, [#allocation12], %s2621_s16, %s2621_s16, %s2622_s12  }
  0x67   : > { %s2623_s6 = smov [#allocation14]   ;;  %s2624_s10 = smov [#allocation7]  }
  0x68   : > { %s538_s8 = sshll.u32 %s2623_s6, 4  ;;  %s458_s17 = sshll.u32 %s2624_s10, 4  ;;  %s539_s8 = int_to_ptr.vmem [resolvable:$true] %s538_s8  ;;  %s459_s17 = int_to_ptr.vmem [resolvable:$true] %s458_s17 }
  0x69   : > { %s2364_s20 = scalar_lea.hbm %s3227_s13, 1024 }
  0x6a   : > { %p2365_p13 = scmp.ne.s32.totalorder %s3227_s13, %s2364_s20  ;;  %p2371_p5 = scmp.lt.u32.totalorder %s2364_s20, %s3227_s13 }
  0x6c   : > { %p2367_p0 = pnand %p2365_p13, %p2775_p8 }
  0x6e   : > { %p2368_p2 = pneg %p2367_p0 }
  0x70   : > { %p2373_p7 = pnand %p2371_p5, %p2368_p2 }
  0x72   : > { %2376 = shalt.err (!%p2373_p7)
}
  0x73   : > { %s2377_s21 = scalar_lea.vmem %s539_s8, 1024  ;;  %p2385_p11 = scmp.lt.s32.totalorder %s539_s8, %s539_s8 }
  0x74   : > { %p2378_p9 = scmp.ne.s32.totalorder %s539_s8, %s2377_s21  ;;  %p2386_p12 = scmp.lt.s32.totalorder %s2377_s21, %s2377_s21 }
  0x76   : > { %p2380_p4 = pnand %p2378_p9, %p2775_p8  ;;  %p2387_p1 = por %p2386_p12, %p2385_p11 }
  0x78   : > { %p2381_p10 = pneg %p2380_p4 }
  0x7a   : > { %p2388_p3 = pnand %p2387_p1, %p2381_p10 }
  0x7c   : > { %2391 = shalt.err (!%p2388_p3)
}
  0x7d   : > { %2138 = dma.hbm_to_vmem [thread:$0]  (!%p2759_p6), %s3227_s13, 1024, %s539_s8, [#allocation15], %s2621_s16, %s2621_s16, %s2622_s12  }
  0x7e   : > { %s3255_s3 = sld [smem:[#allocation26_spill]] }
  0x84   : > { %s2392_s22 = scalar_lea.hbm %s3255_s3, 1024 }
  0x85   : > { %p2393_p1 = scmp.ne.s32.totalorder %s3255_s3, %s2392_s22  ;;  %p2399_p0 = scmp.lt.u32.totalorder %s2392_s22, %s3255_s3 }
  0x87   : > { %p2395_p3 = pnand %p2393_p1, %p2775_p8 }
  0x89   : > { %p2396_p13 = pneg %p2395_p3 }
  0x8b   : > { %p2401_p2 = pnand %p2399_p0, %p2396_p13 }
  0x8d   : > { %2404 = shalt.err (!%p2401_p2)
}
  0x8e   : > { %s2405_s29 = scalar_lea.vmem %s459_s17, 1024  ;;  %p2413_p4 = scmp.lt.s32.totalorder %s459_s17, %s459_s17 }
  0x8f   : > { %p2406_p5 = scmp.ne.s32.totalorder %s459_s17, %s2405_s29  ;;  %p2414_p10 = scmp.lt.s32.totalorder %s2405_s29, %s2405_s29 }
  0x91   : > { %p2408_p7 = pnand %p2406_p5, %p2775_p8  ;;  %p2415_p11 = por %p2414_p10, %p2413_p4 }
  0x93   : > { %p2409_p9 = pneg %p2408_p7 }
  0x95   : > { %p2416_p12 = pnand %p2415_p11, %p2409_p9 }
  0x97   : > { %2419 = shalt.err (!%p2416_p12)
}
  0x98   : > { %2123 = dma.hbm_to_vmem [thread:$0]  (!%p2759_p6), %s3255_s3, 1024, %s459_s17, [#allocation6], %s2621_s16, %s2621_s16, %s2622_s12  }
  0x99   : > { %s2625_s5 = smov [#allocation10]   ;;  %s2626_s6 = smov [#allocation13]  }
  0x9a   : > { %s490_s4 = sshll.u32 %s2625_s5, 4  ;;  %s522_s10 = sshll.u32 %s2626_s6, 4  ;;  %s491_s4 = int_to_ptr.vmem [resolvable:$true] %s490_s4  ;;  %s523_s10 = int_to_ptr.vmem [resolvable:$true] %s522_s10 }
  0x9b   : > { %s2420_s20 = scalar_lea.hbm %s3221_s7, 1024 }
  0x9c   : > { %p2421_p1 = scmp.ne.s32.totalorder %s3221_s7, %s2420_s20  ;;  %p2427_p0 = scmp.lt.u32.totalorder %s2420_s20, %s3221_s7 }
  0x9e   : > { %p2423_p3 = pnand %p2421_p1, %p2775_p8 }
  0xa0   : > { %p2424_p13 = pneg %p2423_p3 }
  0xa2   : > { %p2429_p2 = pnand %p2427_p0, %p2424_p13 }
  0xa4   : > { %2432 = shalt.err (!%p2429_p2)
}
  0xa5   : > { %s2433_s17 = scalar_lea.vmem %s491_s4, 1024  ;;  %p2441_p4 = scmp.lt.s32.totalorder %s491_s4, %s491_s4 }
  0xa6   : > { %p2434_p5 = scmp.ne.s32.totalorder %s491_s4, %s2433_s17  ;;  %p2442_p10 = scmp.lt.s32.totalorder %s2433_s17, %s2433_s17 }
  0xa8   : > { %p2436_p7 = pnand %p2434_p5, %p2775_p8  ;;  %p2443_p11 = por %p2442_p10, %p2441_p4 }
  0xaa   : > { %p2437_p9 = pneg %p2436_p7 }
  0xac   : > { %p2444_p12 = pnand %p2443_p11, %p2437_p9 }
  0xae   : > { %2447 = shalt.err (!%p2444_p12)
}
  0xaf   : > { %2129 = dma.hbm_to_vmem [thread:$0]  (!%p2759_p6), %s3221_s7, 1024, %s491_s4, [#allocation9], %s2621_s16, %s2621_s16, %s2622_s12  }
  0xb0   : > { %s2448_s23 = scalar_lea.hbm %s3225_s11, 1024 }
  0xb1   : > { %p2449_p1 = scmp.ne.s32.totalorder %s3225_s11, %s2448_s23  ;;  %p2455_p0 = scmp.lt.u32.totalorder %s2448_s23, %s3225_s11 }
  0xb3   : > { %p2451_p3 = pnand %p2449_p1, %p2775_p8 }
  0xb5   : > { %p2452_p13 = pneg %p2451_p3 }
  0xb7   : > { %p2457_p2 = pnand %p2455_p0, %p2452_p13 }
  0xb9   : > { %2460 = shalt.err (!%p2457_p2)
}
  0xba   : > { %s2461_s8 = scalar_lea.vmem %s523_s10, 1024  ;;  %p2469_p4 = scmp.lt.s32.totalorder %s523_s10, %s523_s10 }
  0xbb   : > { %p2462_p5 = scmp.ne.s32.totalorder %s523_s10, %s2461_s8  ;;  %p2470_p10 = scmp.lt.s32.totalorder %s2461_s8, %s2461_s8 }
  0xbd   : > { %p2464_p7 = pnand %p2462_p5, %p2775_p8  ;;  %p2471_p11 = por %p2470_p10, %p2469_p4 }
  0xbf   : > { %p2465_p9 = pneg %p2464_p7 }
  0xc1   : > { %p2472_p12 = pnand %p2471_p11, %p2465_p9 }
  0xc3   : > { %2475 = shalt.err (!%p2472_p12)
}
  0xc4   : > { %2135 = dma.hbm_to_vmem [thread:$0]  (!%p2759_p6), %s3225_s11, 1024, %s523_s10, [#allocation12], %s2621_s16, %s2621_s16, %s2622_s12  }
  0xc5   : > { %s2627_s21 = smov [#allocation16]   ;;  %s2476_s23 = scalar_lea.hbm %s3229_s15, 1024 }
  0xc6   : > { %s554_s5 = sshll.u32 %s2627_s21, 4  ;;  %p2477_p1 = scmp.ne.s32.totalorder %s3229_s15, %s2476_s23  ;;  %s555_s5 = int_to_ptr.vmem [resolvable:$true] %s554_s5 }
  0xc7   : > { %p2483_p0 = scmp.lt.u32.totalorder %s2476_s23, %s3229_s15 }
  0xc8   : > { %p2479_p3 = pnand %p2477_p1, %p2775_p8 }
  0xca   : > { %p2480_p13 = pneg %p2479_p3 }
  0xcc   : > { %p2485_p2 = pnand %p2483_p0, %p2480_p13 }
  0xce   : > { %2488 = shalt.err (!%p2485_p2)
}
  0xcf   : > { %s2489_s10 = scalar_lea.vmem %s555_s5, 1024  ;;  %p2497_p4 = scmp.lt.s32.totalorder %s555_s5, %s555_s5 }
  0xd0   : > { %p2490_p5 = scmp.ne.s32.totalorder %s555_s5, %s2489_s10  ;;  %p2498_p10 = scmp.lt.s32.totalorder %s2489_s10, %s2489_s10 }
  0xd2   : > { %p2492_p7 = pnand %p2490_p5, %p2775_p8  ;;  %p2499_p11 = por %p2498_p10, %p2497_p4 }
  0xd4   : > { %p2493_p9 = pneg %p2492_p7 }
  0xd6   : > { %p2500_p12 = pnand %p2499_p11, %p2493_p9 }
  0xd8   : > { %2503 = shalt.err (!%p2500_p12)
}
  0xd9   : > { %2141 = dma.hbm_to_vmem [thread:$0]  (!%p2759_p6), %s3229_s15, 1024, %s555_s5, [#allocation15], %s2621_s16, %s2621_s16, %s2622_s12  }
  0xda   : > { %s1749_s1 = sadd.s32 4294967294, %s2616_s27   ;;  %s2958_s18 = sadd.s32 1, %s2616_s27  }
  0xdb   : > { %s41_s17 = ssub.s32 %s2616_s27, %s2958_s18  ;;  %s44_s21 = sadd.s32 1, %s2612_s26 }
  0xdc   : > { %p42_p8 = scmp.eq.s32.totalorder %s41_s17, 0  ;;  %p51_p1 = scmp.ne.s32.totalorder %s2612_s26, %s2608_s25 }
  0xdd   : > { %p52_p3 = scmp.eq.s32.totalorder %s2616_s27, 0  ;;  %p57_p13 = scmp.ne.s32.totalorder %s2608_s25, %s2604_s24 }
  0xde   : > { %s2969_s6 = scalar_select %p42_p8, %s2612_s26, %s44_s21  }
  0xdf   : > { %p2971_p0 = por %p52_p3, %p51_p1  ;;  %p3257_p2 = scmp.eq.s32.totalorder %s2743_s0, 0 }
  0xe0   : > { %p417_p5 = scmp.eq.s32.totalorder %s2743_s0, 1  ;;  %p423_p7 = scmp.eq.s32.totalorder %s1749_s1, 1 }
  0xe1   : > { %p2977_p6 = por %p3257_p2, %p57_p13  ;;  %p2158_p9 = scmp.lt.s32.totalorder %s2616_s27, 2 }
  0xe2   : > { %s571_s12 = sand.u32 1, %s2612_s26   ;;  %p2984_p4 = por %p417_p5, %p51_p1 }
  0xe3   : > { %p2988_p10 = por %p423_p7, %p57_p13  ;;  %s1760_s20 = sshll.u32 %s571_s12, 2 }
  0xe4   : > { %s3259_s5 = scalar_select %p2984_p4, 1, 0 }
  0xe5   : > { %s3260_s23 = scalar_select %p2988_p10, 1, 0 }
  0xe6   : > { %s1761_s14 = sshll.u32 %s2616_s27, 6  ;;  %s3261_s10 = sld [smem:[#allocation24_spill]] }
  0xe7   : > { %s575_s4 = scalar_lea.vmem [#allocation2], %s1760_s20  ;;  %p3002_p11 = pnand %p2158_p9, %p2971_p0 }
  0xe8   : > { %s582_s1 = sshll.u32 %s575_s4, 4  ;;  %s572_s21 = scalar_lea.sflag [#allocation3], %s571_s12  ;;  %s2998_s1 = int_to_ptr.vmem [resolvable:$true] %s582_s1 }
  0xe9   : > { %p2506_p8 = pneg %p3002_p11 }
  0xec   : > { %s2996_s8 = scalar_lea.hbm %s3261_s10, %s1761_s14  ;;  %s2509_s19 = scalar_lea.hbm %s3261_s10, 128 }
  0xed   : > { %s2504_s3 = scalar_lea.hbm %s2996_s8, 64  ;;  %p2510_p13 = scmp.lt.u32.totalorder %s2996_s8, %s3261_s10 }
  0xee   : > { %p2505_p12 = scmp.ne.s32.totalorder %s2996_s8, %s2504_s3  ;;  %p2511_p0 = scmp.lt.u32.totalorder %s2509_s19, %s2504_s3 }
  0xef   : > { %p2513_p5 = scmp.lt.u32.totalorder %s2504_s3, %s2996_s8 }
  0xf0   : > { %p2507_p1 = pnand %p2506_p8, %p2505_p12  ;;  %p2512_p2 = por %p2511_p0, %p2510_p13 }
  0xf2   : > { %p2508_p3 = pneg %p2507_p1  ;;  %p2514_p7 = por %p2513_p5, %p2512_p2 }
  0xf4   : > { %p2515_p9 = pnand %p2514_p7, %p2508_p3 }
  0xf6   : > { %2518 = shalt.err (!%p2515_p9)
}
  0xf7   : > { %s2519_s12 = scalar_lea.vmem %s2998_s1, 64  ;;  %s2628_s4 = smov [#allocation2]  }
  0xf8   : > { %p2520_p12 = scmp.ne.s32.totalorder %s2998_s1, %s2519_s12  ;;  %s2524_s20 = sshll.u32 %s2628_s4, 4  ;;  %s2525_s20 = int_to_ptr.vmem [resolvable:$false] %s2524_s20 }
  0xf9   : > { %s2526_s14 = scalar_lea.vmem %s2525_s20, 128  ;;  %p2527_p4 = scmp.lt.s32.totalorder %s2998_s1, %s2525_s20 }
  0xfa   : > { %p2522_p1 = pnand %p2520_p12, %p2506_p8  ;;  %p2528_p13 = scmp.lt.s32.totalorder %s2526_s14, %s2519_s12 }
  0xfc   : > { %p2523_p10 = pneg %p2522_p1  ;;  %p2529_p0 = por %p2528_p13, %p2527_p4 }
  0xfe   : > { %p2530_p2 = pnand %p2529_p0, %p2523_p10 }
 0x100   : > { %2533 = shalt.err (!%p2530_p2)
}
 0x101   : > { %2145 = dma.hbm_to_vmem [thread:$0]  (!%p3002_p11), %s2996_s8, 64, %s2998_s1, %s572_s21  }
 0x102   : > { %p3263_p3 = scmp.ne.s32.totalorder %s3250_s30, 0 }
 0x103   : > { %s3034_s3 = sand.u32 (!%p3263_p3), 1, %s2608_s25  }
 0x104   : > { %591 = sbr.rel (%p3263_p3) target bundleno = 2094 (0x82e), region = 88  ;;  %s1763_s19 = sshll.u32 (!%p3263_p3), %s3034_s3, 2 }
 0x105   : > { %s594_s22 = scalar_lea.sflag (!%p3263_p3), [#allocation3], %s3034_s3  ;;  %s3038_s29 = scalar_lea.vmem (!%p3263_p3), [#allocation2], %s1763_s19 }
 0x10b   : > { %2579 = dma.done.wait (%p2977_p6), %s594_s22, 64  }
 0x10c   : > { %2581 = vsyncadd (%p2977_p6), %s594_s22, 4294967232  ;;  %p3264_p4 = scmp.eq.s32.totalorder %s2743_s0, 0 }
 0x10e   : > { %2583 = dma.done.wait (%p3264_p4), [#allocation6], 2048   ;;  %p3265_p10 = pmov %p3264_p4 }
 0x10f   : > { %p3266_p11 = pmov %p3264_p4 }
 0x110   : > { %2585 = vsyncadd (%p3265_p10), [#allocation6], 4294965248 }
 0x111   : > { %2587 = dma.done.wait (%p3266_p11), [#allocation9], 2048   ;;  %p3267_p8 = pmov %p3264_p4 }
 0x112   : > { %p3268_p5 = pmov %p3264_p4 }
 0x113   : > { %2589 = vsyncadd (%p3267_p8), [#allocation9], 4294965248 }
 0x114   : > { %2591 = dma.done.wait (%p3268_p5), [#allocation12], 2048   ;;  %p3269_p7 = pmov %p3264_p4 }
 0x115   : > { %p3270_p6 = pmov %p3264_p4 }
 0x116   : > { %2593 = vsyncadd (%p3269_p7), [#allocation12], 4294965248 }
 0x117   : > { %2595 = dma.done.wait (%p3270_p6), [#allocation15], 2048   ;;  %p3271_p9 = pmov %p3264_p4 }
 0x118   : > { %v2629_v0 = vmov 0.0   ;;  %vm2630_vm0 = vmmov 0   ;;  %v2212_v1 = vld [vmem:[#allocation5] sm:$0xff]   ;;  %v2213_v2 = vld [vmem:[#allocation5 + $0x8] sm:$0xff]   ;;  %v2214_v3 = vld [vmem:[#allocation5 + $0x10] sm:$0xff]   ;;  %s3272_s17 = sld [smem:[#allocation27_spill]] }
 0x119   : > { %2597 = vsyncadd (%p3271_p9), [#allocation15], 4294965248  ;;  %1921 = vmatprep.subr.bf16.mxu0 %v2629_v0  ;;  %1937 = vmatprep.mubr.msk.bf16.mxu0 %vm2630_vm0, %v2629_v0  ;;  %v2220_v4 = vld [vmem:[#allocation7] sm:$0xff]   ;;  %v2215_v5 = vld [vmem:[#allocation5 + $0x18] sm:$0xff]   ;;  %s3273_s4 = sld [smem:[#allocation29_spill]]  ;;  %s3274_s19 = sld [smem:[#allocation30_spill]] }
 0x11a   : > { %1941 = vmatprep.subr.bf16.mxu1 %v2629_v0  ;;  %1957 = vmatprep.mubr.msk.bf16.mxu1 %vm2630_vm0, %v2629_v0  ;;  %v2221_v6 = vld [vmem:[#allocation7 + $0x8] sm:$0xff]   ;;  %v2216_v7 = vld [vmem:[#allocation5 + $0x20] sm:$0xff]   ;;  %v2222_v8 = vld [vmem:[#allocation7 + $0x10] sm:$0xff]   ;;  %s3275_s30 = sld [smem:[#allocation31_spill]]  ;;  %s3276_s1 = sld [smem:[#allocation32_spill]] }
 0x11b   : > { %1922 = vmatpush3.bf16.msra.mxu0 %v2212_v1  ;;  %1942 = vmatpush3.bf16.msra.mxu1 %v2220_v4  ;;  %v2217_v9 = vld [vmem:[#allocation5 + $0x28] sm:$0xff]   ;;  %v2223_v10 = vld [vmem:[#allocation7 + $0x18] sm:$0xff]   ;;  %v2218_v11 = vld [vmem:[#allocation5 + $0x30] sm:$0xff]   ;;  %s3277_s12 = sld [smem:[#allocation33_spill]]  ;;  %s3278_s14 = sld [smem:[#allocation34_spill]] }
 0x11c   : > { %1923 = vmatprep.subr.bf16.mxu0 %v2629_v0  ;;  %1943 = vmatprep.subr.bf16.mxu1 %v2629_v0  ;;  %v2224_v12 = vld [vmem:[#allocation7 + $0x20] sm:$0xff]   ;;  %v2219_v13 = vld [vmem:[#allocation5 + $0x38] sm:$0xff]   ;;  %v2225_v14 = vld [vmem:[#allocation7 + $0x28] sm:$0xff]   ;;  %s1846_s22 = sshll.u32 %s2743_s0, 7  ;;  %s1590_s21 = scalar_lea.sflag [#allocation4], %s3034_s3 }
 0x11d   : > { %v681_v15 = vld [vmem:[%s3038_s29] sm:$0xf]  ;;  %v2226_v16 = vld [vmem:[#allocation7 + $0x30] sm:$0xff]   ;;  %v2228_v18 = vld [vmem:[#allocation8] sm:$0xff]   ;;  %p3280_p1 = scmp.ne.s32.totalorder %s3259_s5, 0  ;;  %s2631_s0 = smov [#allocation17]  }
 0x11e   : > { %v2227_v17 = vld [vmem:[#allocation7 + $0x38] sm:$0xff]   ;;  %v2229_v19 = vld [vmem:[#allocation8 + $0x8] sm:$0xff]   ;;  %v2230_v20 = vld [vmem:[#allocation8 + $0x10] sm:$0xff]  }
 0x11f   : > { %1924 = vmatpush3.bf16.msra.mxu0 %v2213_v2  ;;  %1944 = vmatpush3.bf16.msra.mxu1 %v2221_v6  ;;  %v2231_v21 = vld [vmem:[#allocation8 + $0x18] sm:$0xff]   ;;  %v2232_v22 = vld [vmem:[#allocation8 + $0x20] sm:$0xff]   ;;  %v2233_v23 = vld [vmem:[#allocation8 + $0x28] sm:$0xff]  }
 0x120   : > { %1925 = vmatprep.subr.bf16.mxu0 %v2629_v0  ;;  %1945 = vmatprep.subr.bf16.mxu1 %v2629_v0  ;;  %v1773_v24 = vld [vmem:[%s3216_s2] ss:$0 sm:$0xff]  ;;  %v2234_v32 = vld [vmem:[#allocation8 + $0x30] sm:$0xff]   ;;  %v2236_v34 = vld [vmem:[#allocation10] sm:$0xff]  }
 0x121   : > { %v2235_v33 = vld [vmem:[#allocation8 + $0x38] sm:$0xff]   ;;  %v2237_v35 = vld [vmem:[#allocation10 + $0x8] sm:$0xff]   ;;  %v2238_v36 = vld [vmem:[#allocation10 + $0x10] sm:$0xff]  }
 0x122   : > { %v2239_v37 = vld [vmem:[#allocation10 + $0x18] sm:$0xff]   ;;  %v2240_v38 = vld [vmem:[#allocation10 + $0x20] sm:$0xff]   ;;  %v2241_v39 = vld [vmem:[#allocation10 + $0x28] sm:$0xff]  }
 0x123   : > { %1926 = vmatpush3.bf16.msra.mxu0 %v2214_v3  ;;  %1946 = vmatpush3.bf16.msra.mxu1 %v2222_v8  ;;  %v1782_v40 = vld [vmem:[%s3272_s17] ss:$0 sm:$0xff]  ;;  %v2242_v48 = vld [vmem:[#allocation10 + $0x30] sm:$0xff]   ;;  %v2244_v50 = vld [vmem:[#allocation11] sm:$0xff]  }
 0x124   : > { %1927 = vmatprep.subr.bf16.mxu0 %v2629_v0  ;;  %1947 = vmatprep.subr.bf16.mxu1 %v2629_v0  ;;  %v2243_v49 = vld [vmem:[#allocation10 + $0x38] sm:$0xff]   ;;  %v2245_v51 = vld [vmem:[#allocation11 + $0x8] sm:$0xff]   ;;  %v2246_v52 = vld [vmem:[#allocation11 + $0x10] sm:$0xff]  }
 0x125   : > { %v2247_v53 = vld [vmem:[#allocation11 + $0x18] sm:$0xff]   ;;  %v2248_v54 = vld [vmem:[#allocation11 + $0x20] sm:$0xff]   ;;  %v2249_v55 = vld [vmem:[#allocation11 + $0x28] sm:$0xff]  }
 0x126   : > { %v2250_v56 = vld [vmem:[#allocation11 + $0x30] sm:$0xff]   ;;  %v1791_v57 = vld [vmem:[%s3273_s4] ss:$0 sm:$0xff]  ;;  %v2252_v3 = vld [vmem:[#allocation13] sm:$0xff]   ;;  %s2538_s4 = sshll.u32 %s2631_s0, 4  ;;  %s2539_s4 = int_to_ptr.vmem [resolvable:$false] %s2538_s4 }
 0x127   : > { %1928 = vmatpush3.bf16.msra.mxu0 %v2215_v5  ;;  %1948 = vmatpush3.bf16.msra.mxu1 %v2223_v10  ;;  %v2251_v2 = vld [vmem:[#allocation11 + $0x38] sm:$0xff]   ;;  %v2253_v4 = vld [vmem:[#allocation13 + $0x8] sm:$0xff]   ;;  %v2254_v5 = vld [vmem:[#allocation13 + $0x10] sm:$0xff]   ;;  %s2540_s20 = scalar_lea.vmem %s2539_s4, 256 }
 0x128   : > { %1929 = vmatprep.subr.bf16.mxu0 %v2629_v0  ;;  %1949 = vmatprep.subr.bf16.mxu1 %v2629_v0  ;;  %v2255_v6 = vld [vmem:[#allocation13 + $0x18] sm:$0xff]   ;;  %v2257_v8 = vld [vmem:[#allocation13 + $0x28] sm:$0xff]  }
 0x12b   : > { %1930 = vmatpush3.bf16.msra.mxu0 %v2216_v7  ;;  %1950 = vmatpush3.bf16.msra.mxu1 %v2224_v12  ;;  %v2256_v7 = vld [vmem:[#allocation13 + $0x20] sm:$0xff]  }
 0x12c   : > { %1931 = vmatprep.subr.bf16.mxu0 %v2629_v0  ;;  %1951 = vmatprep.subr.bf16.mxu1 %v2629_v0 }
 0x12f   : > { %1932 = vmatpush3.bf16.msra.mxu0 %v2217_v9  ;;  %1952 = vmatpush3.bf16.msra.mxu1 %v2225_v14  ;;  %v1800_v9 = vld [vmem:[%s3274_s19] ss:$0 sm:$0xff]  ;;  %s1772_s19 = sshll.u32 %s3034_s3, 3 }
 0x130   : > { %1933 = vmatprep.subr.bf16.mxu0 %v2629_v0  ;;  %1953 = vmatprep.subr.bf16.mxu1 %v2629_v0  ;;  %s679_s29 = scalar_lea.vmem [#allocation17], %s1772_s19 }
 0x133   : > { %1934 = vmatpush3.bf16.msra.mxu0 %v2218_v11  ;;  %1954 = vmatpush3.bf16.msra.mxu1 %v2226_v16  ;;  %v2258_v16 = vld [vmem:[#allocation13 + $0x30] sm:$0xff]  }
 0x134   : > { %1935 = vmatprep.subr.bf16.mxu0 %v2629_v0  ;;  %1955 = vmatprep.subr.bf16.mxu1 %v2629_v0 }
 0x137   : > { %1936 = vmatpush3.bf16.msra.mxu0 %v2219_v13  ;;  %1956 = vmatpush3.bf16.msra.mxu1 %v2227_v17  ;;  %v2259_v17 = vld [vmem:[#allocation13 + $0x38] sm:$0xff]  }
 0x138   : > { %1961 = vmatprep.subr.bf16.mxu0 %v2629_v0  ;;  %1981 = vmatprep.subr.bf16.mxu1 %v2629_v0 }
 0x13a   : > { %1938 = vmatmul.mubr.bf16.vlgmr.msra.gmra.mrb[0].mxu0 %v681_v15 }
 0x13b   : > { %1977 = vmatprep.mubr.msk.bf16.mxu0 %vm2630_vm0, %v2629_v0  ;;  %1962 = vmatpush3.bf16.msra.mxu0 %v2228_v18  ;;  %v2260_v18 = vld [vmem:[#allocation14] sm:$0xff]  }
 0x13c   : > { %1963 = vmatprep.subr.bf16.mxu0 %v2629_v0 }
 0x13f   : > { %1964 = vmatpush3.bf16.msra.mxu0 %v2229_v19  ;;  %v2261_v19 = vld [vmem:[#allocation14 + $0x8] sm:$0xff]  }
 0x140   : > { %1965 = vmatprep.subr.bf16.mxu0 %v2629_v0 }
 0x143   : > { %1966 = vmatpush3.bf16.msra.mxu0 %v2230_v20  ;;  %v2262_v20 = vld [vmem:[#allocation14 + $0x10] sm:$0xff]  }
 0x144   : > { %1967 = vmatprep.subr.bf16.mxu0 %v2629_v0 }
 0x147   : > { %1968 = vmatpush3.bf16.msra.mxu0 %v2231_v21  ;;  %v2263_v21 = vld [vmem:[#allocation14 + $0x18] sm:$0xff]  }
 0x148   : > { %1969 = vmatprep.subr.bf16.mxu0 %v2629_v0 }
 0x14b   : > { %1970 = vmatpush3.bf16.msra.mxu0 %v2232_v22  ;;  %v2264_v22 = vld [vmem:[#allocation14 + $0x20] sm:$0xff]  }
 0x14c   : > { %1971 = vmatprep.subr.bf16.mxu0 %v2629_v0 }
 0x14f   : > { %1972 = vmatpush3.bf16.msra.mxu0 %v2233_v23  ;;  %v2265_v23 = vld [vmem:[#allocation14 + $0x28] sm:$0xff]  }
 0x150   : > { %1973 = vmatprep.subr.bf16.mxu0 %v2629_v0 }
 0x153   : > { %1974 = vmatpush3.bf16.msra.mxu0 %v2234_v32  ;;  %v2266_v32 = vld [vmem:[#allocation14 + $0x30] sm:$0xff]  }
 0x154   : > { %1975 = vmatprep.subr.bf16.mxu0 %v2629_v0 }
 0x157   : > { %1976 = vmatpush3.bf16.msra.mxu0 %v2235_v33  ;;  %v2267_v33 = vld [vmem:[#allocation14 + $0x38] sm:$0xff]  }
 0x158   : > { %2001 = vmatprep.subr.bf16.mxu0 %v2629_v0 }
 0x20d   : > { %v787_v25 = vpop.f32.mrb[0].mxu0 }
 0x20e   : > { %v788_v26 = vadd.f32 %v1773_v24, %v787_v25  ;;  %v1939_v27 = vpop.f32.mrb[1].mxu0  ;;  %v1809_v24 = vld [vmem:[%s3275_s30] ss:$0 sm:$0xff]  ;;  %s1603_s30 = sshll.u32 %s679_s29, 4  ;;  %s3172_s30 = int_to_ptr.vmem [resolvable:$true] %s1603_s30 }
 0x20f   : > { %v790_v28 = vpop.f32.mrb[2].mxu0  ;;  %p2541_p2 = scmp.lt.s32.totalorder %s3172_s30, %s2539_s4 }
 0x210   : > { %v793_v29 = vmax.f32 %v788_v26, 0.0  ;;  %v1940_v30 = vpop.f32.mrb[3].mxu0 }
 0x212   : > { %v794_v31 = vpack.c.bf16 %v793_v29, %v793_v29 }
 0x214   : > { %1958 = vmatmul.mubr.bf16.vlgmr.msra.gmra.mrb[0].mxu1 %v794_v31 }
 0x215   : > { %1997 = vmatprep.mubr.msk.bf16.mxu1 %vm2630_vm0, %v2629_v0  ;;  %1982 = vmatpush3.bf16.msra.mxu1 %v2236_v34  ;;  %v2268_v34 = vld [vmem:[#allocation16] sm:$0xff]  }
 0x216   : > { %1983 = vmatprep.subr.bf16.mxu1 %v2629_v0 }
 0x219   : > { %1984 = vmatpush3.bf16.msra.mxu1 %v2237_v35  ;;  %v2269_v35 = vld [vmem:[#allocation16 + $0x8] sm:$0xff]  }
 0x21a   : > { %1985 = vmatprep.subr.bf16.mxu1 %v2629_v0 }
 0x21d   : > { %1986 = vmatpush3.bf16.msra.mxu1 %v2238_v36  ;;  %v2270_v36 = vld [vmem:[#allocation16 + $0x10] sm:$0xff]  }
 0x21e   : > { %1987 = vmatprep.subr.bf16.mxu1 %v2629_v0 }
 0x221   : > { %1988 = vmatpush3.bf16.msra.mxu1 %v2239_v37  ;;  %v2271_v37 = vld [vmem:[#allocation16 + $0x18] sm:$0xff]  }
 0x222   : > { %1989 = vmatprep.subr.bf16.mxu1 %v2629_v0 }
 0x225   : > { %1990 = vmatpush3.bf16.msra.mxu1 %v2240_v38  ;;  %v2272_v38 = vld [vmem:[#allocation16 + $0x20] sm:$0xff]  }
 0x226   : > { %1991 = vmatprep.subr.bf16.mxu1 %v2629_v0 }
 0x229   : > { %1992 = vmatpush3.bf16.msra.mxu1 %v2241_v39  ;;  %v2273_v39 = vld [vmem:[#allocation16 + $0x28] sm:$0xff]  }
 0x22a   : > { %1993 = vmatprep.subr.bf16.mxu1 %v2629_v0 }
 0x22d   : > { %1994 = vmatpush3.bf16.msra.mxu1 %v2242_v48  ;;  %v2274_v48 = vld [vmem:[#allocation16 + $0x30] sm:$0xff]  }
 0x22e   : > { %1995 = vmatprep.subr.bf16.mxu1 %v2629_v0 }
 0x231   : > { %1996 = vmatpush3.bf16.msra.mxu1 %v2243_v49  ;;  %v2275_v49 = vld [vmem:[#allocation16 + $0x38] sm:$0xff]  }
 0x232   : > { %2021 = vmatprep.subr.bf16.mxu1 %v2629_v0 }
 0x2e7   : > { %v900_v41 = vpop.f32.mrb[0].mxu1 }
 0x2e8   : > { %v901_v42 = vadd.f32 %v1782_v40, %v900_v41  ;;  %v1959_v43 = vpop.f32.mrb[1].mxu1  ;;  %v1818_v40 = vld [vmem:[%s3276_s1] ss:$0 sm:$0xff]  ;;  %s3279_s1 = sld [smem:[#allocation35_spill]] }
 0x2e9   : > { %v903_v44 = vpop.f32.mrb[2].mxu1 }
 0x2ea   : > { %v906_v45 = vmax.f32 %v901_v42, 0.0  ;;  %v1960_v46 = vpop.f32.mrb[3].mxu1 }
 0x2ec   : > { %v907_v47 = vpack.c.bf16 %v906_v45, %v906_v45 }
 0x2ee   : > { %1978 = vmatmul.mubr.bf16.vlgmr.msra.gmra.mrb[4].mxu0 %v907_v47  ;;  %s3170_s17 = scalar_lea.hbm %s3279_s1, %s1846_s22 }
 0x2ef   : > { %2017 = vmatprep.mubr.msk.bf16.mxu0 %vm2630_vm0, %v2629_v0  ;;  %2002 = vmatpush3.bf16.msra.mxu0 %v2244_v50  ;;  %v1827_v50 = vld [vmem:[%s3277_s12] ss:$0 sm:$0xff]  ;;  %s2534_s12 = scalar_lea.vmem %s3172_s30, 128 }
 0x2f0   : > { %2003 = vmatprep.subr.bf16.mxu0 %v2629_v0  ;;  %p2535_p12 = scmp.ne.s32.totalorder %s3172_s30, %s2534_s12  ;;  %p2542_p3 = scmp.lt.s32.totalorder %s2540_s20, %s2534_s12 }
 0x2f2   : > { %p2536_p13 = pnand %p2535_p12, %p3280_p1  ;;  %p2543_p4 = por %p2542_p3, %p2541_p2 }
 0x2f3   : > { %2004 = vmatpush3.bf16.msra.mxu0 %v2245_v51 }
 0x2f4   : > { %2005 = vmatprep.subr.bf16.mxu0 %v2629_v0  ;;  %p2537_p0 = pneg %p2536_p13 }
 0x2f6   : > { %p2544_p10 = pnand %p2543_p4, %p2537_p0 }
 0x2f7   : > { %2006 = vmatpush3.bf16.msra.mxu0 %v2246_v52 }
 0x2f8   : > { %2007 = vmatprep.subr.bf16.mxu0 %v2629_v0 }
 0x2fb   : > { %2008 = vmatpush3.bf16.msra.mxu0 %v2247_v53 }
 0x2fc   : > { %2009 = vmatprep.subr.bf16.mxu0 %v2629_v0 }
 0x2ff   : > { %2010 = vmatpush3.bf16.msra.mxu0 %v2248_v54 }
 0x300   : > { %2011 = vmatprep.subr.bf16.mxu0 %v2629_v0 }
 0x303   : > { %2012 = vmatpush3.bf16.msra.mxu0 %v2249_v55 }
 0x304   : > { %2013 = vmatprep.subr.bf16.mxu0 %v2629_v0 }
 0x307   : > { %2014 = vmatpush3.bf16.msra.mxu0 %v2250_v56 }
 0x308   : > { %2015 = vmatprep.subr.bf16.mxu0 %v2629_v0 }
 0x30b   : > { %2016 = vmatpush3.bf16.msra.mxu0 %v2251_v2 }
 0x30c   : > { %2041 = vmatprep.subr.bf16.mxu0 %v2629_v0 }
 0x3c1   : > { %v1013_v58 = vpop.f32.mrb[4].mxu0 }
 0x3c2   : > { %v1014_v59 = vadd.f32 %v1791_v57, %v1013_v58  ;;  %v1979_v60 = vpop.f32.mrb[5].mxu0 }
 0x3c3   : > { %v1016_v61 = vpop.f32.mrb[6].mxu0 }
 0x3c4   : > { %v1019_v62 = vmax.f32 %v1014_v59, 0.0  ;;  %v1980_v63 = vpop.f32.mrb[7].mxu0 }
 0x3c6   : > { %v1020_v1 = vpack.c.bf16 %v1019_v62, %v1019_v62 }
 0x3c8   : > { %1998 = vmatmul.mubr.bf16.vlgmr.msra.gmra.mrb[4].mxu1 %v1020_v1 }
 0x3c9   : > { %2037 = vmatprep.mubr.msk.bf16.mxu1 %vm2630_vm0, %v2629_v0  ;;  %2022 = vmatpush3.bf16.msra.mxu1 %v2252_v3 }
 0x3ca   : > { %2023 = vmatprep.subr.bf16.mxu1 %v2629_v0 }
 0x3cd   : > { %2024 = vmatpush3.bf16.msra.mxu1 %v2253_v4 }
 0x3ce   : > { %2025 = vmatprep.subr.bf16.mxu1 %v2629_v0 }
 0x3d1   : > { %2026 = vmatpush3.bf16.msra.mxu1 %v2254_v5 }
 0x3d2   : > { %2027 = vmatprep.subr.bf16.mxu1 %v2629_v0 }
 0x3d5   : > { %2028 = vmatpush3.bf16.msra.mxu1 %v2255_v6 }
 0x3d6   : > { %2029 = vmatprep.subr.bf16.mxu1 %v2629_v0 }
 0x3d9   : > { %2030 = vmatpush3.bf16.msra.mxu1 %v2256_v7 }
 0x3da   : > { %2031 = vmatprep.subr.bf16.mxu1 %v2629_v0 }
 0x3dd   : > { %2032 = vmatpush3.bf16.msra.mxu1 %v2257_v8 }
 0x3de   : > { %2033 = vmatprep.subr.bf16.mxu1 %v2629_v0 }
 0x3e1   : > { %2034 = vmatpush3.bf16.msra.mxu1 %v2258_v16 }
 0x3e2   : > { %2035 = vmatprep.subr.bf16.mxu1 %v2629_v0 }
 0x3e5   : > { %2036 = vmatpush3.bf16.msra.mxu1 %v2259_v17 }
 0x3e6   : > { %2061 = vmatprep.subr.bf16.mxu1 %v2629_v0 }
 0x49b   : > { %v1126_v10 = vpop.f32.mrb[4].mxu1 }
 0x49c   : > { %v1127_v11 = vadd.f32 %v1800_v9, %v1126_v10  ;;  %v1999_v12 = vpop.f32.mrb[5].mxu1 }
 0x49d   : > { %v1129_v13 = vpop.f32.mrb[6].mxu1 }
 0x49e   : > { %v1132_v14 = vpack.c.bf16 %v1127_v11, %v1127_v11  ;;  %v2000_v15 = vpop.f32.mrb[7].mxu1 }
 0x4a0   : > { %2018 = vmatmul.mubr.bf16.vlgmr.msra.gmra.mrb[8].mxu0 %v1132_v14 }
 0x4a1   : > { %2057 = vmatprep.mubr.msk.bf16.mxu0 %vm2630_vm0, %v2629_v0  ;;  %2042 = vmatpush3.bf16.msra.mxu0 %v2260_v18 }
 0x4a2   : > { %2043 = vmatprep.subr.bf16.mxu0 %v2629_v0 }
 0x4a5   : > { %2044 = vmatpush3.bf16.msra.mxu0 %v2261_v19 }
 0x4a6   : > { %2045 = vmatprep.subr.bf16.mxu0 %v2629_v0 }
 0x4a9   : > { %2046 = vmatpush3.bf16.msra.mxu0 %v2262_v20 }
 0x4aa   : > { %2047 = vmatprep.subr.bf16.mxu0 %v2629_v0 }
 0x4ad   : > { %2048 = vmatpush3.bf16.msra.mxu0 %v2263_v21 }
 0x4ae   : > { %2049 = vmatprep.subr.bf16.mxu0 %v2629_v0 }
 0x4b1   : > { %2050 = vmatpush3.bf16.msra.mxu0 %v2264_v22 }
 0x4b2   : > { %2051 = vmatprep.subr.bf16.mxu0 %v2629_v0 }
 0x4b5   : > { %2052 = vmatpush3.bf16.msra.mxu0 %v2265_v23 }
 0x4b6   : > { %2053 = vmatprep.subr.bf16.mxu0 %v2629_v0 }
 0x4b9   : > { %2054 = vmatpush3.bf16.msra.mxu0 %v2266_v32 }
 0x4ba   : > { %2055 = vmatprep.subr.bf16.mxu0 %v2629_v0 }
 0x4bd   : > { %2056 = vmatpush3.bf16.msra.mxu0 %v2267_v33 }
 0x573   : > { %v1238_v25 = vpop.f32.mrb[8].mxu0 }
 0x574   : > { %v1239_v26 = vadd.f32 %v1809_v24, %v1238_v25  ;;  %v2019_v27 = vpop.f32.mrb[9].mxu0 }
 0x575   : > { %v1241_v28 = vpop.f32.mrb[10].mxu0 }
 0x576   : > { %v1244_v29 = vmax.f32 %v1239_v26, 0.0  ;;  %v2020_v30 = vpop.f32.mrb[11].mxu0 }
 0x578   : > { %v1245_v31 = vpack.c.bf16 %v1244_v29, %v1244_v29 }
 0x57a   : > { %2038 = vmatmul.mubr.bf16.vlgmr.msra.gmra.mrb[8].mxu1 %v1245_v31 }
 0x57b   : > { %2077 = vmatprep.mubr.msk.bf16.mxu1 %vm2630_vm0, %v2629_v0  ;;  %2062 = vmatpush3.bf16.msra.mxu1 %v2268_v34 }
 0x57c   : > { %2063 = vmatprep.subr.bf16.mxu1 %v2629_v0 }
 0x57f   : > { %2064 = vmatpush3.bf16.msra.mxu1 %v2269_v35 }
 0x580   : > { %2065 = vmatprep.subr.bf16.mxu1 %v2629_v0 }
 0x583   : > { %2066 = vmatpush3.bf16.msra.mxu1 %v2270_v36 }
 0x584   : > { %2067 = vmatprep.subr.bf16.mxu1 %v2629_v0 }
 0x587   : > { %2068 = vmatpush3.bf16.msra.mxu1 %v2271_v37 }
 0x588   : > { %2069 = vmatprep.subr.bf16.mxu1 %v2629_v0 }
 0x58b   : > { %2070 = vmatpush3.bf16.msra.mxu1 %v2272_v38 }
 0x58c   : > { %2071 = vmatprep.subr.bf16.mxu1 %v2629_v0 }
 0x58f   : > { %2072 = vmatpush3.bf16.msra.mxu1 %v2273_v39 }
 0x590   : > { %2073 = vmatprep.subr.bf16.mxu1 %v2629_v0 }
 0x593   : > { %2074 = vmatpush3.bf16.msra.mxu1 %v2274_v48 }
 0x594   : > { %2075 = vmatprep.subr.bf16.mxu1 %v2629_v0  ;;  %v1836_v0 = vld [vmem:[%s3278_s14] ss:$0 sm:$0xff] }
 0x597   : > { %2076 = vmatpush3.bf16.msra.mxu1 %v2275_v49 }
 0x64d   : > { %v1351_v41 = vpop.f32.mrb[8].mxu1 }
 0x64e   : > { %v1352_v42 = vadd.f32 %v1818_v40, %v1351_v41  ;;  %v2039_v43 = vpop.f32.mrb[9].mxu1 }
 0x64f   : > { %v1354_v44 = vpop.f32.mrb[10].mxu1 }
 0x650   : > { %v1357_v45 = vmax.f32 %v1352_v42, 0.0  ;;  %v2040_v46 = vpop.f32.mrb[11].mxu1 }
 0x652   : > { %v1358_v47 = vpack.c.bf16 %v1357_v45, %v1357_v45 }
 0x654   : > { %2058 = vmatmul.mubr.bf16.vlgmr.msra.gmra.mrb[12].mxu0 %v1358_v47 }
 0x727   : > { %v1464_v51 = vpop.f32.mrb[12].mxu0 }
 0x728   : > { %v1465_v52 = vadd.f32 %v1827_v50, %v1464_v51  ;;  %v2059_v53 = vpop.f32.mrb[13].mxu0 }
 0x729   : > { %v1467_v54 = vpop.f32.mrb[14].mxu0 }
 0x72a   : > { %v1470_v55 = vmax.f32 %v1465_v52, 0.0  ;;  %v2060_v56 = vpop.f32.mrb[15].mxu0 }
 0x72c   : > { %v1471_v57 = vpack.c.bf16 %v1470_v55, %v1470_v55 }
 0x72e   : > { %2078 = vmatmul.mubr.bf16.vlgmr.msra.gmra.mrb[12].mxu1 %v1471_v57 }
 0x801   : > { %v1577_v58 = vpop.f32.mrb[12].mxu1 }
 0x802   : > { %v1578_v59 = vadd.f32 %v1836_v0, %v1577_v58  ;;  %v2079_v60 = vpop.f32.mrb[13].mxu1 }
 0x803   : > { %v1580_v61 = vpop.f32.mrb[14].mxu1 }
 0x804   : > { %v1583_v62 = vsub.f32 0.0, %v1578_v59  ;;  %v2080_v63 = vpop.f32.mrb[15].mxu1 }
 0x806   : > { %v1584_v1 = vmul.f32 1.442695, %v1583_v62 }
 0x808   : > { %2276 = vpow2.f32 %v1584_v1 }
 0x812   : > { %v2277_v2 = vpop.eup %2276 }
 0x813   : > { %v1586_v3 = vadd.f32 1.0, %v2277_v2 }
 0x815   : > { %2278 = vrcp.f32 %v1586_v3 }
 0x81f   : > { %v2279_v4 = vpop.eup %2278 }
 0x820   : > { %1588 = vst [vmem:[%s679_s29] sm:$0xff] %v2279_v4 }
 0x821   : > { %2547 = shalt.err (!%p2544_p10)
}
 0x822   : > { %s2548_s3 = scalar_lea.hbm %s3170_s17, 128  ;;  %s2552_s22 = scalar_lea.hbm %s3279_s1, 256 }
 0x823   : > { %p2549_p11 = scmp.ne.s32.totalorder %s3170_s17, %s2548_s3  ;;  %p2553_p7 = scmp.lt.u32.totalorder %s3170_s17, %s3279_s1 }
 0x824   : > { %p2554_p6 = scmp.lt.u32.totalorder %s2552_s22, %s2548_s3  ;;  %p2556_p12 = scmp.lt.u32.totalorder %s2548_s3, %s3170_s17 }
 0x825   : > { %p2550_p8 = pnand %p2549_p11, %p3280_p1 }
 0x826   : > { %p2555_p9 = por %p2554_p6, %p2553_p7 }
 0x827   : > { %p2551_p5 = pneg %p2550_p8 }
 0x828   : > { %p2557_p13 = por %p2556_p12, %p2555_p9 }
 0x82a   : > { %p2558_p0 = pnand %p2557_p13, %p2551_p5 }
 0x82c   : > { %2561 = shalt.err (!%p2558_p0)
}
 0x82d   : > { %2115 = dma.vmem_to_hbm [thread:$0]  (%p3280_p1), %s3172_s30, 128, %s3170_s17, %s1590_s21  }
 0x82e PF: > { %s1615_s8 = sand.u32 1, %s2604_s24   ;;  %p3281_p2 = scmp.ne.s32.totalorder %s3260_s23, 0 }
 0x82f   : > { %p3282_p3 = scmp.ge.s32.totalorder %s2616_s27, 2  ;;  %s1616_s12 = scalar_lea.sflag [#allocation4], %s1615_s8 }
 0x831   : > { %p2147_p4 = pnand %p3282_p3, %p3281_p2 }
 0x833   : > { %2599 = dma.done.wait (!%p2147_p4), %s1616_s12, 128  }
 0x834   : > { %2601 = vsyncadd (!%p2147_p4), %s1616_s12, 4294967168  ;;  %p34_p10 = scmp.ge.s32.totalorder %s2958_s18, 4   ;;  %s3283_s24 = smov %s2608_s25 }
 0x835   : > { %s3284_s25 = smov %s2612_s26  ;;  %s3285_s26 = smov %s2969_s6 }
 0x836   : > { %s3286_s27 = smov %s2958_s18  ;;  %36 = sbr.rel (!%p34_p10) target bundleno = 22 (0x16), region = 165 }
 0x83d   :  { %1621 = vsyncpa [#allocation3], 1 }
 0x83e   :  { %1623 = vsyncpa [#allocation3 + $0x1], 1 }
 0x83f   :  { %1624 = vsyncpa [#allocation6], 1 }
 0x840   :  { %1625 = vsyncpa [#allocation9], 1 }
 0x841   :  { %1626 = vsyncpa [#allocation12], 1 }
 0x842   :  { %1627 = vsyncpa [#allocation15], 1 }
 0x843   :  { %1628 = vsyncpa [#allocation4], 1 }
 0x844   :  { %1630 = vsyncpa [#allocation4 + $0x1], 1 }

</bundles_post_ra>
